<compile_context>
chip_gen: v6e
topology: v6e:2x2x1
jax: 0.10.0
libtpu: 0.0.40
codegen_flags: <defaults>
</compile_context>

<pallas_src>
import functools

import jax
import jax.numpy as jnp
from jax.experimental import pallas as pl
from jax.experimental.pallas import tpu as pltpu


def shallowtempo_kernel(xf_ref, w1_ref, w2_ref, w3_ref, c_ref, out_ref, *, H):
    # xf_ref : (bn*H, C*W + 1) bf16  per-row flattened input + ones column
    # w1_ref : (C*W + 1, k*W)  bf16  conv1 as banded matmul weight (+ b1 row)
    # w2_ref : (k*W, 3*K2)     bf16  fused 3-shift conv2 weight, pre-scaled by 1/H
    # w3_ref : (3*K2, 3*OUTP)  bf16  block-diagonal conv3 weight (lane padded)
    # c_ref  : (1, 3*K2 + 3*OUTP + OUTP) f32 packed constants:
    #          [0 : 3*K2]             conv2 bias + folded pool-pad-row constant
    #          [3*K2 : 3*K2+3*OUTP]   conv3 bias, tiled over the 3 shifts
    #          [3*K2+3*OUTP : end]    parameter-only term (16 border + 6 bias rows)
    # out_ref: (bn, OUTP)      f32
    bn, OUTP = out_ref.shape
    kW = w1_ref.shape[1]
    K2_3 = w2_ref.shape[1]
    OUTP3 = w3_ref.shape[1]

    # ---- layer1: Conv2d(C, k, (1,3), pad=1) + bias + ReLU as one bf16 MXU dot ----
    a1 = jnp.maximum(
        jnp.dot(xf_ref[...], w1_ref[...], preferred_element_type=jnp.float32),
        0.0)                                                      # (bn*H, kW)

    # ---- AvgPool2d((H,1)): first H rows of the H+2-row padded conv1 output ----
    # Input rows 0..H-2 of each sample are in the pool window (row H-1 is not);
    # mask it out and sum across H (cheap cross-sublane reduce on the XLU).
    # The 1/H scale is folded into w2_ref; relu(b1)/H (pad row) is in the bias.
    row = jax.lax.broadcasted_iota(jnp.int32, a1.shape, 0)
    a1 = jnp.where((row % H) < (H - 1), a1, 0.0)
    pooled = a1.reshape(bn, H, kW).sum(axis=1)                    # (bn, kW)

    # ---- layer2: Conv2d(k, 64k, (1,W), pad=1) + ReLU, 3 W-shifts fused ----
    b2eff = c_ref[:, 0:K2_3]
    a2 = jnp.maximum(
        jnp.dot(pooled.astype(jnp.bfloat16), w2_ref[...],
                preferred_element_type=jnp.float32) + b2eff, 0.0)  # (bn, 3*K2)

    # ---- layer3: Conv2d(64k, OUT, 1, pad=1) + ReLU, block-diag over shifts ----
    b3t = c_ref[:, K2_3:K2_3 + OUTP3]
    c3 = c_ref[:, K2_3 + OUTP3:K2_3 + OUTP3 + OUTP]
    r3 = jnp.maximum(
        jnp.dot(a2.astype(jnp.bfloat16), w3_ref[...],
                preferred_element_type=jnp.float32) + b3t, 0.0)    # (bn, 3*OUTP)
    data_sum = (r3[:, 0:OUTP] + r3[:, OUTP:2 * OUTP]
                + r3[:, 2 * OUTP:3 * OUTP])                        # (bn, OUTP)

    # global mean over the 5x5 padded layer-3 output:
    # 16 border + 6 bias-row positions are in c3; the 3 data positions in data_sum.
    out_ref[...] = (data_sum + c3) * (1.0 / 25.0)


def prepare_params(params, input_size):
    """One-time parameter preprocessing (run at init, not per forward call)."""
    W1, b1, W2, b2, W3, b3 = params
    C, H, Wd = input_size
    assert H >= 3, "AvgPool2d((H,1)) on the padded conv1 output needs H >= 3"
    k = W1.shape[0]
    K2 = W2.shape[0]
    OUT = W3.shape[0]
    kW = k * Wd
    OUTP = ((OUT + 127) // 128) * 128
    f32 = jnp.float32

    # conv1 as a banded matmul over the UNPADDED per-row input (the W
    # zero-padding is folded into the band), plus a bias row (ones-col trick):
    #   w1big[c*W + wi, o*W + wo] = W1[o, c, 0, wi - wo + 1]   (|wi - wo| <= 1)
    w1sq = W1.reshape(k, C, 3).astype(f32)
    band = jnp.zeros((C, Wd, k, Wd), f32)
    for kw in range(3):
        B = jnp.eye(Wd, Wd, k=-(kw - 1), dtype=f32)    # B[wi,wo]=1 iff wi-wo==kw-1
        band = band + jnp.einsum('oc,iw->ciow', w1sq[:, :, kw], B)
    w1big = band.reshape(C * Wd, kW)
    b1rep = jnp.repeat(b1.astype(f32), Wd).reshape(1, kW)        # lane = o*W + wo
    w1big = jnp.concatenate([w1big, b1rep], axis=0).astype(jnp.bfloat16)  # (C*W+1, kW)

    # fused layer-2 weight: three W-shifts concatenated along output lanes,
    # pre-scaled by the 1/H avg-pool factor.
    W2s = W2.reshape(K2, k, Wd).astype(f32)
    w2_c = W2s.reshape(K2, kW).T                                                  # shift 1
    w2_l = jnp.pad(W2s[:, :, 1:], ((0, 0), (0, 0), (0, 1))).reshape(K2, kW).T     # shift 0
    w2_r = jnp.pad(W2s[:, :, :-1], ((0, 0), (0, 0), (1, 0))).reshape(K2, kW).T    # shift 2
    w2cat = jnp.concatenate([w2_l, w2_c, w2_r], axis=1)          # (kW, 3*K2)
    w2eff = (w2cat * (1.0 / H)).astype(jnp.bfloat16)
    # conv2 bias + contribution of conv1's zero-padded row (relu(b1)/H) to the pool.
    b2eff = (jnp.tile(b2.astype(f32), 3).reshape(1, 3 * K2)
             + (jnp.maximum(b1rep, 0.0) * (1.0 / H)) @ w2cat)    # (1, 3*K2)

    # layer-3: block-diagonal weight (lane-padded) + tiled bias + parameter-only
    # constant term (16 border + 6 bias-only positions of the 5x5 output).
    w3t = W3.reshape(OUT, K2).T.astype(f32)                      # (K2, OUT)
    b3row = b3.reshape(1, OUT).astype(f32)
    const3 = (16.0 * jnp.maximum(b3row, 0.0)
              + 6.0 * jnp.maximum(
                  jnp.maximum(b2.reshape(1, K2).astype(f32), 0.0) @ w3t + b3row,
                  0.0))                                          # (1, OUT)
    padc = OUTP - OUT
    w3t_p = jnp.pad(w3t, ((0, 0), (0, padc)))                    # (K2, OUTP)
    w3blk = jnp.kron(jnp.eye(3, dtype=f32), w3t_p).astype(jnp.bfloat16)   # (3*K2, 3*OUTP)
    b3t_p = jnp.tile(jnp.pad(b3row, ((0, 0), (0, padc))), (1, 3))         # (1, 3*OUTP)
    c3_p = jnp.pad(const3, ((0, 0), (0, padc)))                           # (1, OUTP)
    consts = jnp.concatenate([b2eff, b3t_p, c3_p], axis=1)       # (1, 3*K2+4*OUTP)

    dims = dict(C=C, H=H, W=Wd, k=k, K2=K2, OUT=OUT, OUTP=OUTP)
    return (w1big, w2eff, w3blk, consts, dims)


def shallowtempo_forward(x, prepared):
    """x: (N, C, H, W) float32, NCHW.  Returns (N, output_size) float32."""
    w1big, w2eff, w3blk, consts, dims = prepared
    N, C, H, Wd = x.shape
    assert (C, H, Wd) == (dims['C'], dims['H'], dims['W'])
    kW = dims['k'] * Wd
    K2 = dims['K2']
    OUT, OUTP = dims['OUT'], dims['OUTP']
    Cin1 = C * Wd + 1

    # per-call input glue: per-row flatten + ones column (bias trick), bf16.
    xf = jnp.transpose(x.astype(jnp.float32), (0, 2, 1, 3)).reshape(N * H, C * Wd)
    xf = jnp.pad(xf, ((0, 0), (0, 1)), constant_values=1.0).astype(jnp.bfloat16)

    # batch block: whole batch for small N, otherwise a multiple-of-8 divisor
    # (keeps the (8,128) block constraint when the grid has >1 step).
    bn = N
    for cand in (256, 128, 64, 32, 16, 8):
        if N % cand == 0:
            bn = cand
            break
    grid = (N // bn,)

    flops = 2 * N * (H * Cin1 * kW + kW * 3 * K2 + 3 * K2 * 3 * OUTP)
    bytes_accessed = (xf.size * 2 + w1big.size * 2 + w2eff.size * 2
                      + w3blk.size * 2 + consts.size * 4 + N * OUTP * 4)

    out = pl.pallas_call(
        functools.partial(shallowtempo_kernel, H=H),
        out_shape=jax.ShapeDtypeStruct((N, OUTP), jnp.float32),
        grid=grid,
        in_specs=[
            pl.BlockSpec((bn * H, Cin1), lambda i: (i, 0)),
            pl.BlockSpec(w1big.shape, lambda i: (0, 0)),
            pl.BlockSpec(w2eff.shape, lambda i: (0, 0)),
            pl.BlockSpec(w3blk.shape, lambda i: (0, 0)),
            pl.BlockSpec(consts.shape, lambda i: (0, 0)),
        ],
        out_specs=pl.BlockSpec((bn, OUTP), lambda i: (i, 0)),
        compiler_params=pltpu.CompilerParams(
            dimension_semantics=("parallel",)),
        cost_estimate=pl.CostEstimate(flops=flops, transcendentals=0,
                                      bytes_accessed=bytes_accessed),
    )(xf, w1big, w2eff, w3blk, consts)
    return out[:, :OUT]


def init_params(key, C, W, k, out_size):
    """Deterministic synthetic parameters with the nn.Module's shapes (OIHW)."""
    K2 = 64 * k
    ks = jax.random.split(key, 6)
    W1 = jax.random.normal(ks[0], (k, C, 1, 3), jnp.float32) * 0.1
    b1 = jax.random.normal(ks[1], (k,), jnp.float32) * 0.1
    W2 = jax.random.normal(ks[2], (K2, k, 1, W), jnp.float32) * 0.1
    b2 = jax.random.normal(ks[3], (K2,), jnp.float32) * 0.1
    W3 = jax.random.normal(ks[4], (out_size, K2, 1, 1), jnp.float32) * 0.1
    b3 = jax.random.normal(ks[5], (out_size,), jnp.float32) * 0.1
    return W1, b1, W2, b2, W3, b3


def reference_forward(x, params):
    """Pure-JAX replica of the PyTorch forward (dropout = identity)."""
    W1, b1, W2, b2, W3, b3 = params
    H = x.shape[2]
    dn = ('NCHW', 'OIHW', 'NCHW')
    y = jax.lax.conv_general_dilated(x, W1, (1, 1), ((1, 1), (1, 1)),
                                     dimension_numbers=dn)
    y = jax.nn.relu(y + b1[None, :, None, None])
    y = jax.lax.reduce_window(y, 0.0, jax.lax.add,
                              (1, 1, H, 1), (1, 1, H, 1), 'VALID') / H
    y = jax.lax.conv_general_dilated(y, W2, (1, 1), ((1, 1), (1, 1)),
                                     dimension_numbers=dn)
    y = jax.nn.relu(y + b2[None, :, None, None])
    y = jax.lax.conv_general_dilated(y, W3, (1, 1), ((1, 1), (1, 1)),
                                     dimension_numbers=dn)
    y = jax.nn.relu(y + b3[None, :, None, None])
    return y.mean(axis=(2, 3))


if __name__ == "__main__":
    # ShallowTempo(input_size=(C, H, W)=(4, 8, 16), output_size=10, k=4, p_dropout=0.1)
    N, C, H, Wd = 2, 4, 8, 16
    k, OUT = 4, 10

    key = jax.random.PRNGKey(0)
    kx, kp = jax.random.split(key)
    x = jax.random.normal(kx, (N, C, H, Wd), jnp.float32)
    params = init_params(kp, C, Wd, k, OUT)

    prepared = prepare_params(params, (C, H, Wd))   # one-time init-side work
    out = shallowtempo_forward(x, prepared)
    out = jax.block_until_ready(out)
    assert out.shape == (N, OUT) and out.dtype == jnp.float32

    ref = reference_forward(x, params)
    err = float(jnp.max(jnp.abs(out - ref)))
    if err > 3e-2:
        raise AssertionError(f"kernel/reference mismatch: max abs err = {err}")

    print("KERNEL_OK")
</pallas_src>

<mosaic_0001>
module attributes {stable_mosaic.version = 11 : i64} {
  func.func @shallowtempo_kernel(%arg0: i32, %arg1: memref<16x65xbf16, #tpu.memory_space<vmem>>, %arg2: memref<65x64xbf16, #tpu.memory_space<vmem>>, %arg3: memref<64x768xbf16, #tpu.memory_space<vmem>>, %arg4: memref<768x384xbf16, #tpu.memory_space<vmem>>, %arg5: memref<1x1280xf32, #tpu.memory_space<vmem>>, %arg6: memref<2x128xf32, #tpu.memory_space<vmem>>) attributes {dimension_semantics = [#tpu.dimension_semantics<parallel>], iteration_bounds = array<i64: 1>, scalar_prefetch = 0 : i64, scratch_operands = 0 : i64, tpu.core_type = #tpu.core_type<tc>, window_params = [{transform_indices = @transform_0, window_bounds = array<i64: 16, 65>}, {pipeline_mode = #tpu.pipeline_mode<synchronous>, transform_indices = @transform_1, window_bounds = array<i64: 65, 64>}, {pipeline_mode = #tpu.pipeline_mode<synchronous>, transform_indices = @transform_2, window_bounds = array<i64: 64, 768>}, {pipeline_mode = #tpu.pipeline_mode<synchronous>, transform_indices = @transform_3, window_bounds = array<i64: 768, 384>}, {pipeline_mode = #tpu.pipeline_mode<synchronous>, transform_indices = @transform_4, window_bounds = array<i64: 1, 1280>}, {transform_indices = @transform_5, window_bounds = array<i64: 2, 128>}]} {
    %c0 = arith.constant 0 : index
    %c0_0 = arith.constant 0 : index
    %0 = vector.load %arg1[%c0, %c0_0] : memref<16x65xbf16, #tpu.memory_space<vmem>>, vector<16x65xbf16>
    %c0_1 = arith.constant 0 : index
    %c0_2 = arith.constant 0 : index
    %1 = vector.load %arg2[%c0_1, %c0_2] : memref<65x64xbf16, #tpu.memory_space<vmem>>, vector<65x64xbf16>
    %cst = arith.constant dense<0.000000e+00> : vector<16x64xf32>
    %2 = tpu.matmul %0, %1, %cst {dimension_numbers = #tpu.dot_dimension_numbers<[1], [0], [0], [1], [0, 0, 1, 1], [], []>} : vector<16x65xbf16>, vector<65x64xbf16>, vector<16x64xf32> -> vector<16x64xf32>
    %cst_3 = arith.constant 0.000000e+00 : f32
    %3 = vector.broadcast %cst_3 : f32 to vector<16x64xf32>
    %4 = arith.maximumf %2, %3 : vector<16x64xf32>
    %5 = tpu.iota {dimensions = array<i32: 0>} : vector<16x64xi32>
    %c8_i32 = arith.constant 8 : i32
    %c0_i32 = arith.constant 0 : i32
    %6 = arith.cmpi eq, %c8_i32, %c0_i32 : i32
    %c1_i32 = arith.constant 1 : i32
    %7 = arith.select %6, %c1_i32, %c8_i32 : i32
    %8 = vector.broadcast %7 : i32 to vector<16x64xi32>
    %9 = arith.remsi %5, %8 : vector<16x64xi32>
    %c0_i32_4 = arith.constant 0 : i32
    %10 = vector.broadcast %c0_i32_4 : i32 to vector<16x64xi32>
    %11 = arith.cmpi ne, %9, %10 : vector<16x64xi32>
    %c0_i32_5 = arith.constant 0 : i32
    %12 = vector.broadcast %c0_i32_5 : i32 to vector<16x64xi32>
    %13 = arith.cmpi slt, %9, %12 : vector<16x64xi32>
    %c0_i32_6 = arith.constant 0 : i32
    %14 = arith.cmpi slt, %7, %c0_i32_6 : i32
    %15 = vector.broadcast %14 : i1 to vector<16x64xi1>
    %16 = vector.broadcast %15 : vector<16x64xi1> to vector<16x64xi1>
    %17 = arith.xori %13, %16 : vector<16x64xi1>
    %18 = arith.andi %17, %11 : vector<16x64xi1>
    %19 = vector.broadcast %7 : i32 to vector<16x64xi32>
    %20 = arith.addi %9, %19 : vector<16x64xi32>
    %21 = arith.select %18, %20, %9 : vector<16x64xi1>, vector<16x64xi32>
    %c7_i32 = arith.constant 7 : i32
    %22 = vector.broadcast %c7_i32 : i32 to vector<16x64xi32>
    %23 = arith.cmpi slt, %21, %22 : vector<16x64xi32>
    %cst_7 = arith.constant 0.000000e+00 : f32
    %24 = vector.broadcast %cst_7 : f32 to vector<16x64xf32>
    %25 = arith.select %23, %4, %24 : vector<16x64xi1>, vector<16x64xf32>
    %26 = vector.shape_cast %25 : vector<16x64xf32> to vector<2x8x64xf32>
    %cst_8 = arith.constant dense<0.000000e+00> : vector<2x64xf32>
    %27 = vector.multi_reduction <add>, %26, %cst_8 [1] : vector<2x8x64xf32> to vector<2x64xf32>
    %c0_9 = arith.constant 0 : index
    %c0_10 = arith.constant 0 : index
    %28 = vector.load %arg5[%c0_9, %c0_10] : memref<1x1280xf32, #tpu.memory_space<vmem>>, vector<1x768xf32>
    %29 = arith.truncf %27 : vector<2x64xf32> to vector<2x64xbf16>
    %c0_11 = arith.constant 0 : index
    %c0_12 = arith.constant 0 : index
    %30 = vector.load %arg3[%c0_11, %c0_12] : memref<64x768xbf16, #tpu.memory_space<vmem>>, vector<64x768xbf16>
    %cst_13 = arith.constant dense<0.000000e+00> : vector<2x768xf32>
    %31 = tpu.matmul %29, %30, %cst_13 {dimension_numbers = #tpu.dot_dimension_numbers<[1], [0], [0], [1], [0, 0, 1, 1], [], []>} : vector<2x64xbf16>, vector<64x768xbf16>, vector<2x768xf32> -> vector<2x768xf32>
    %32 = vector.broadcast %28 : vector<1x768xf32> to vector<2x768xf32>
    %33 = arith.addf %31, %32 : vector<2x768xf32>
    %cst_14 = arith.constant 0.000000e+00 : f32
    %34 = vector.broadcast %cst_14 : f32 to vector<2x768xf32>
    %35 = arith.maximumf %33, %34 : vector<2x768xf32>
    %c0_15 = arith.constant 0 : index
    %c768 = arith.constant 768 : index
    %36 = vector.load %arg5[%c0_15, %c768] : memref<1x1280xf32, #tpu.memory_space<vmem>>, vector<1x384xf32>
    %c0_16 = arith.constant 0 : index
    %c1152 = arith.constant 1152 : index
    %37 = vector.load %arg5[%c0_16, %c1152] : memref<1x1280xf32, #tpu.memory_space<vmem>>, vector<1x128xf32>
    %38 = arith.truncf %35 : vector<2x768xf32> to vector<2x768xbf16>
    %c0_17 = arith.constant 0 : index
    %c0_18 = arith.constant 0 : index
    %39 = vector.load %arg4[%c0_17, %c0_18] : memref<768x384xbf16, #tpu.memory_space<vmem>>, vector<768x384xbf16>
    %cst_19 = arith.constant dense<0.000000e+00> : vector<2x384xf32>
    %40 = tpu.matmul %38, %39, %cst_19 {dimension_numbers = #tpu.dot_dimension_numbers<[1], [0], [0], [1], [0, 0, 1, 1], [], []>} : vector<2x768xbf16>, vector<768x384xbf16>, vector<2x384xf32> -> vector<2x384xf32>
    %41 = vector.broadcast %36 : vector<1x384xf32> to vector<2x384xf32>
    %42 = arith.addf %40, %41 : vector<2x384xf32>
    %cst_20 = arith.constant 0.000000e+00 : f32
    %43 = vector.broadcast %cst_20 : f32 to vector<2x384xf32>
    %44 = arith.maximumf %42, %43 : vector<2x384xf32>
    %45 = vector.extract_strided_slice %44 {offsets = [0, 0], sizes = [2, 128], strides = [1, 1]} : vector<2x384xf32> to vector<2x128xf32>
    %46 = vector.extract_strided_slice %44 {offsets = [0, 128], sizes = [2, 128], strides = [1, 1]} : vector<2x384xf32> to vector<2x128xf32>
    %47 = arith.addf %45, %46 : vector<2x128xf32>
    %48 = vector.extract_strided_slice %44 {offsets = [0, 256], sizes = [2, 128], strides = [1, 1]} : vector<2x384xf32> to vector<2x128xf32>
    %49 = arith.addf %47, %48 : vector<2x128xf32>
    %50 = vector.broadcast %37 : vector<1x128xf32> to vector<2x128xf32>
    %51 = arith.addf %49, %50 : vector<2x128xf32>
    %cst_21 = arith.constant 4.000000e-02 : f32
    %52 = vector.broadcast %cst_21 : f32 to vector<2x128xf32>
    %53 = arith.mulf %51, %52 : vector<2x128xf32>
    %c0_22 = arith.constant 0 : index
    %c0_23 = arith.constant 0 : index
    %54 = vector.load %arg6[%c0_22, %c0_23] : memref<2x128xf32, #tpu.memory_space<vmem>>, vector<2x128xf32>
    tpu.vector_store %arg6[%c0_22, %c0_23], %53 {strides = array<i32>} : memref<2x128xf32, #tpu.memory_space<vmem>>, vector<2x128xf32>,
    return
  }
  func.func @transform_0(%arg0: i32) -> (i32, i32) {
    %c0_i32 = arith.constant 0 : i32
    %c0_i32_0 = arith.constant 0 : i32
    return %arg0, %c0_i32 : i32, i32
  }
  func.func @transform_1(%arg0: i32) -> (i32, i32) {
    %c0_i32 = arith.constant 0 : i32
    %c0_i32_0 = arith.constant 0 : i32
    %c0_i32_1 = arith.constant 0 : i32
    return %c0_i32, %c0_i32_0 : i32, i32
  }
  func.func @transform_2(%arg0: i32) -> (i32, i32) {
    %c0_i32 = arith.constant 0 : i32
    %c0_i32_0 = arith.constant 0 : i32
    %c0_i32_1 = arith.constant 0 : i32
    return %c0_i32, %c0_i32_0 : i32, i32
  }
  func.func @transform_3(%arg0: i32) -> (i32, i32) {
    %c0_i32 = arith.constant 0 : i32
    %c0_i32_0 = arith.constant 0 : i32
    %c0_i32_1 = arith.constant 0 : i32
    return %c0_i32, %c0_i32_0 : i32, i32
  }
  func.func @transform_4(%arg0: i32) -> (i32, i32) {
    %c0_i32 = arith.constant 0 : i32
    %c0_i32_0 = arith.constant 0 : i32
    %c0_i32_1 = arith.constant 0 : i32
    return %c0_i32, %c0_i32_0 : i32, i32
  }
  func.func @transform_5(%arg0: i32) -> (i32, i32) {
    %c0_i32 = arith.constant 0 : i32
    %c0_i32_0 = arith.constant 0 : i32
    return %arg0, %c0_i32 : i32, i32
  }
}

</mosaic_0001>

<bundles_post_ra>
// kernel: tpu_custom_call.1
= control target key start
LH: loop header
LB: loop body
LE: loop exit
PB: predicated region body
PF: predicated region fallthrough
CT: control target
= control target key end

     0   :  { %10 = vsyncpa [#allocation3], 0  ;;  %s2475_s0 = inlined_call_operand.vmem [shape: bf16[16,65], index: 0, kind: input, shape index: {}]   ;;  %s2476_s1 = inlined_call_operand.vmem [shape: bf16[65,64], index: 1, kind: input, shape index: {}]   ;;  %s2477_s2 = inlined_call_operand.hbm [shape: bf16[64,768], index: 2, kind: input, shape index: {}]   ;;  %s2478_s3 = inlined_call_operand.hbm [shape: bf16[768,384], index: 3, kind: input, shape index: {}]   ;;  %s2479_s4 = inlined_call_operand.vmem [shape: f32[1,1280], index: 4, kind: input, shape index: {}]   ;;  %s2480_s5 = inlined_call_operand.hbm [shape: f32[2,128], index: 5, kind: output, shape index: {}]  }
   0x1   :  { %11 = vsyncpa [#allocation6], 0 }
   0x2   :  { %12 = vsyncpa [#allocation4], 0  ;;  %s2341_s18 = smov [#allocation2]  }
   0x3   :  { %s22_s19 = sshll.u32 %s2341_s18, 4  ;;  %s23_s19 = int_to_ptr.vmem [resolvable:$true] %s22_s19 }
   0x4   :  { %s2283_s20 = scalar_lea.vmem %s23_s19, 3072  ;;  %p2288_p1 = scmp.lt.s32.totalorder %s23_s19, %s23_s19 }
   0x5   :  { %p2284_p0 = scmp.ne.s32.totalorder %s23_s19, %s2283_s20  ;;  %p2289_p2 = scmp.lt.s32.totalorder %s2283_s20, %s2283_s20 }
   0x7   :  { %p2290_p3 = por %p2289_p2, %p2288_p1 }
   0x9   :  { %p2291_p4 = pnand %p2290_p3, %p2284_p0 }
   0xb   :  { %2294 = shalt.err (!%p2291_p4)
}
   0xc   :  { %s2342_s21 = smov 384   ;;  %s2343_s22 = smov 24  }
   0xd   :  { %28 = dma.hbm_to_vmem [thread:$0]  %s2477_s2, 3072, %s23_s19, [#allocation3], %s2342_s21, %s2342_s21, %s2343_s22  }
   0xe   :  { %s2344_s25 = smov [#allocation5]  }
   0xf   :  { %s34_s26 = sshll.u32 %s2344_s25, 4  ;;  %s35_s26 = int_to_ptr.vmem [resolvable:$true] %s34_s26 }
  0x10   :  { %s2303_s27 = scalar_lea.vmem %s35_s26, 18432  ;;  %p2308_p6 = scmp.lt.s32.totalorder %s35_s26, %s35_s26 }
  0x11   :  { %p2304_p5 = scmp.ne.s32.totalorder %s35_s26, %s2303_s27  ;;  %p2309_p7 = scmp.lt.s32.totalorder %s2303_s27, %s2303_s27 }
  0x13   :  { %p2310_p8 = por %p2309_p7, %p2308_p6 }
  0x15   :  { %p2311_p9 = pnand %p2310_p8, %p2304_p5 }
  0x17   :  { %2314 = shalt.err (!%p2311_p9)
}
  0x18   :  { %s2345_s28 = smov 192   ;;  %s2346_s29 = smov 12  }
  0x19   :  { %40 = dma.hbm_to_vmem [thread:$0]  %s2478_s3, 18432, %s35_s26, [#allocation6], %s2345_s28, %s2345_s28, %s2346_s29  }
  0x1a   :  { %2335 = dma.done.wait [#allocation3], 3072  }
  0x1b   :  { %2336 = vsyncadd [#allocation3], 4294964224 }
  0x1c   :  { %2337 = dma.done.wait [#allocation6], 18432  }
  0x1d   :  { %2338 = vsyncadd [#allocation6], 4294948864  ;;  %v2347_v0 = vmov 0.0   ;;  %vm2348_vm0 = vmmov 0   ;;  %v2349_v1 = vmov 0   ;;  %vm97_vm1 = vcmask 1040384  }
  0x1e   :  { %2017 = vmatprep.subr.bf16.mxu0 %v2347_v0  ;;  %2027 = vmatprep.mubr.msk.bf16.mxu0 %vm2348_vm0, %v2347_v0  ;;  %v99_v2 = vsel %vm97_vm1, 65535, %v2349_v1  ;;  %v2041_v3 = vld [vmem:[%s2476_s1 + $0x20] ss:$0 sps:$4 sm:$0x11]   ;;  %v2042_v5 = vld [vmem:[%s2476_s1 + $0x18] sm:$0xff]   ;;  %v2043_v6 = vld [vmem:[%s2476_s1 + $0x10] sm:$0xff]   ;;  %v146_v28 = vlaneseq }
  0x1f   :  { %453 = vmatprep.mubr.bf16.mxu1 %v2349_v1  ;;  %v101_v4 = vand.u32 %v2041_v3, %v99_v2  ;;  %v2044_v7 = vld [vmem:[%s2476_s1 + $0x8] sm:$0xff]   ;;  %v2045_v8 = vld [vmem:[%s2476_s1] sm:$0xff]   ;;  %vm93_vm2 = vcmask 531456   ;;  %v2050_v12 = vld [vmem:[#allocation2 + $0x9c] ss:$24 sps:$4 sm:$0xff]   ;;  %vm177_vm4 = vcmask 523264  }
  0x20   :  { %v2046_v9 = vld [vmem:[%s2475_s0] sm:$0xff]   ;;  %v2049_v10 = vld [vmem:[#allocation2 + $0x94] ss:$24 sps:$4 sm:$0xff]   ;;  %v2047_v11 = vld [vmem:[#allocation2 + $0x90] ss:$24 sps:$4 sm:$0xff]   ;;  %429 = vmatprep.subr.bf16.mxu1 %v2050_v12  ;;  %v2408_v29 = vshrl.u32 %v146_v28, 7 }
  0x21   :  { %2018 = vmatpush3.bf16.msra.mxu0 %v101_v4  ;;  %v2052_v13 = vld [vmem:[#allocation2 + $0x98] ss:$24 sps:$4 sm:$0xff]   ;;  %v2055_v14 = vld [vmem:[#allocation2 + $0x64] ss:$24 sps:$4 sm:$0xff]   ;;  %v2058_v17 = vld [vmem:[#allocation2 + $0x68] ss:$24 sps:$4 sm:$0xff]  }
  0x22   :  { %2019 = vmatprep.subr.bf16.mxu0 %v2347_v0  ;;  %430 = vmatpush1.bf16.msra.mxu1 %v2052_v13  ;;  %v2053_v15 = vld [vmem:[#allocation2 + $0x60] ss:$24 sps:$4 sm:$0xff]   ;;  %v2056_v16 = vld [vmem:[#allocation2 + $0x6c] ss:$24 sps:$4 sm:$0xff]   ;;  %v2059_v19 = vld [vmem:[#allocation2 + $0x30] ss:$24 sps:$4 sm:$0xff]  }
  0x23   :  { %431 = vmatprep.subr.bf16.mxu1 %v2056_v16  ;;  %v2061_v18 = vld [vmem:[#allocation2 + $0x34] ss:$24 sps:$4 sm:$0xff]   ;;  %v2064_v21 = vld [vmem:[#allocation2 + $0x38] ss:$24 sps:$4 sm:$0xff]   ;;  %v2067_v22 = vld [vmem:[#allocation2 + $0x4] ss:$24 sps:$4 sm:$0xff]  }
  0x24   :  { %v2062_v20 = vld [vmem:[#allocation2 + $0x3c] ss:$24 sps:$4 sm:$0xff]   ;;  %v2065_v23 = vld [vmem:[#allocation2] ss:$24 sps:$4 sm:$0xff]   ;;  %v2068_v24 = vld [vmem:[#allocation2 + $0xc] ss:$24 sps:$4 sm:$0xff]  }
  0x25   :  { %2020 = vmatpush3.bf16.msra.mxu0 %v2042_v5  ;;  %v2070_v25 = vld [vmem:[#allocation2 + $0x8] ss:$24 sps:$4 sm:$0xff]   ;;  %v2073_v26 = vld [vmem:[#allocation2 + $0xa4] ss:$24 sps:$4 sm:$0xff]   ;;  %v2085_v27 = vld [vmem:[#allocation5 + $0xac] ss:$12 sps:$4 sm:$0xff]  }
  0x26   :  { %2021 = vmatprep.subr.bf16.mxu0 %v2347_v0  ;;  %432 = vmatpush1.bf16.msra.mxu1 %v2058_v17  ;;  %v153_v30 = vand.u32 7, %v2408_v29  ;;  %v148_v31 = vadd.s32 8, %v2408_v29  ;;  %vm254_vm6 = vcmask 1041409   ;;  %v2071_v59 = vld [vmem:[#allocation2 + $0xa0] ss:$24 sps:$4 sm:$0xff]   ;;  %s2350_s21 = smov [#allocation7]  }
  0x27   :  { %433 = vmatprep.subr.bf16.mxu1 %v2062_v20  ;;  %v2076_v62 = vld [vmem:[#allocation2 + $0x74] ss:$24 sps:$4 sm:$0xff]   ;;  %v2074_v2 = vld [vmem:[#allocation2 + $0x70] ss:$24 sps:$4 sm:$0xff]   ;;  %v2079_v3 = vld [vmem:[#allocation2 + $0x44] ss:$24 sps:$4 sm:$0xff]  }
  0x28   :  { %vm173_vm3 = vcmp.lt.s32.totalorder %v153_v30, 7  ;;  %v160_v33 = vand.u32 7, %v148_v31  ;;  %v2083_v63 = vld [vmem:[#allocation5 + $0xa8] ss:$12 sps:$4 sm:$0xff]   ;;  %v2089_v4 = vld [vmem:[#allocation5 + $0x90] ss:$12 sps:$4 sm:$0xff]  }
  0x29   :  { %2022 = vmatpush3.bf16.msra.mxu0 %v2043_v6  ;;  %v2097_v5 = vld [vmem:[#allocation5 + $0x7c] ss:$12 sps:$4 sm:$0xff]   ;;  %v2077_v6 = vld [vmem:[#allocation2 + $0x40] ss:$24 sps:$4 sm:$0xff]   ;;  %s1756_s22 = sshll.u32 %s2350_s21, 4  ;;  %s1757_s22 = int_to_ptr.vmem [resolvable:$true] %s1756_s22 }
  0x2a   :  { %2023 = vmatprep.subr.bf16.mxu0 %v2347_v0  ;;  %434 = vmatpush1.bf16.msra.mxu1 %v2064_v21  ;;  %vm174_vm5 = vcmp.lt.s32.totalorder %v160_v33, 7  ;;  %v2109_v12 = vld [vmem:[#allocation5 + $0x4c] ss:$12 sps:$4 sm:$0xff]   ;;  %v2086_v13 = vld [vmem:[#allocation5 + $0x228] ss:$12 sps:$4 sm:$0xff]   ;;  %s2315_s23 = scalar_lea.vmem %s1757_s22, 32  ;;  %p2320_p11 = scmp.lt.s32.totalorder %s1757_s22, %s1757_s22 }
  0x2b   :  { %435 = vmatprep.subr.bf16.mxu1 %v2068_v24  ;;  %v2115_v16 = vld [vmem:[#allocation5 + $0x34] ss:$12 sps:$4 sm:$0xff]   ;;  %v2092_v17 = vld [vmem:[#allocation5 + $0x210] ss:$12 sps:$4 sm:$0xff]   ;;  %v2098_v21 = vld [vmem:[#allocation5 + $0x1f8] ss:$12 sps:$4 sm:$0xff]   ;;  %p2316_p10 = scmp.ne.s32.totalorder %s1757_s22, %s2315_s23  ;;  %p2321_p12 = scmp.lt.s32.totalorder %s2315_s23, %s2315_s23 }
  0x2c   :  { %v2121_v20 = vld [vmem:[#allocation5 + $0x1c] ss:$12 sps:$4 sm:$0xff]   ;;  %v2127_v24 = vld [vmem:[#allocation5 + $0x4] ss:$12 sps:$4 sm:$0xff]   ;;  %v2133_v28 = vld [vmem:[#allocation5 + $0x16c] ss:$12 sps:$4 sm:$0xff]  }
  0x2d   :  { %2024 = vmatpush3.bf16.msra.mxu0 %v2044_v7  ;;  %v2082_v7 = vld [vmem:[#allocation2 + $0x14] ss:$24 sps:$4 sm:$0xff]   ;;  %p2322_p13 = por %p2321_p12, %p2320_p11 }
  0x2e   :  { %2025 = vmatprep.subr.bf16.mxu0 %v2347_v0  ;;  %436 = vmatpush1.bf16.msra.mxu1 %v2070_v25  ;;  %v2091_v0 = vld [vmem:[#allocation5 + $0x94] ss:$12 sps:$4 sm:$0xff]  }
  0x2f   :  { %1493 = vmatprep.subr.bf16.mxu1 %v2085_v27  ;;  %v2104_v25 = vld [vmem:[#allocation5 + $0x1e0] ss:$12 sps:$4 sm:$0xff]   ;;  %v2110_v30 = vld [vmem:[#allocation5 + $0x1c8] ss:$12 sps:$4 sm:$0xff]   ;;  %p2323_p0 = pnand %p2322_p13, %p2316_p10 }
  0x30   :  { %v2125_v27 = vld [vmem:[#allocation5] ss:$12 sps:$4 sm:$0xff]  }
  0x31   :  { %2026 = vmatpush3.bf16.msra.mxu0 %v2045_v8  ;;  %v2095_v8 = vld [vmem:[#allocation5 + $0x78] ss:$12 sps:$4 sm:$0xff]   ;;  %v2118_v31 = vld [vmem:[#allocation5 + $0x1b4] ss:$12 sps:$4 sm:$0xff]  }
  0x32   :  { %388 = vmatprep.subr.bf16.mxu0 %v2049_v10  ;;  %v2080_v10 = vld [vmem:[#allocation2 + $0x10] ss:$24 sps:$4 sm:$0xff]   ;;  %v2139_v33 = vld [vmem:[#allocation5 + $0x154] ss:$12 sps:$4 sm:$0xff]  }
  0x34   :  { %2028 = vmatmul.mubr.msk.bf16.vlgmr.msra.gmra.mxu0 %vm93_vm2, %v2046_v9  ;;  %v2103_v9 = vld [vmem:[#allocation5 + $0x64] ss:$12 sps:$4 sm:$0xff]  }
  0x35   :  { %412 = vmatprep.mubr.bf16.mxu0 %v2349_v1  ;;  %389 = vmatpush1.bf16.msra.mxu0 %v2047_v11  ;;  %v2088_v11 = vld [vmem:[#allocation5 + $0x22c] ss:$12 sps:$4 sm:$0xff]  }
  0x36   :  { %390 = vmatprep.subr.bf16.mxu0 %v2055_v14  ;;  %v2094_v14 = vld [vmem:[#allocation5 + $0x214] ss:$12 sps:$4 sm:$0xff]  }
  0x39   :  { %391 = vmatpush1.bf16.msra.mxu0 %v2053_v15  ;;  %v2107_v15 = vld [vmem:[#allocation5 + $0x48] ss:$12 sps:$4 sm:$0xff]  }
  0x3a   :  { %392 = vmatprep.subr.bf16.mxu0 %v2061_v18  ;;  %v2100_v18 = vld [vmem:[#allocation5 + $0x1fc] ss:$12 sps:$4 sm:$0xff]  }
  0x3d   :  { %393 = vmatpush1.bf16.msra.mxu0 %v2059_v19  ;;  %v2113_v19 = vld [vmem:[#allocation5 + $0x30] ss:$12 sps:$4 sm:$0xff]  }
  0x3e   :  { %394 = vmatprep.subr.bf16.mxu0 %v2067_v22  ;;  %v2106_v22 = vld [vmem:[#allocation5 + $0x1e4] ss:$12 sps:$4 sm:$0xff]  }
  0x41   :  { %395 = vmatpush1.bf16.msra.mxu0 %v2065_v23  ;;  %v2119_v23 = vld [vmem:[#allocation5 + $0x18] ss:$12 sps:$4 sm:$0xff]  }
  0x42   :  { %470 = vmatprep.subr.bf16.mxu0 %v2073_v26  ;;  %v2112_v26 = vld [vmem:[#allocation5 + $0x1cc] ss:$12 sps:$4 sm:$0xff]  }
  0xf4   :  { %v137_v32 = vpop.f32.mrf.mxu0 }
  0xf5   :  { %v144_v34 = vmax.f32 %v137_v32, 0.0  ;;  %v2131_v32 = vld [vmem:[#allocation5 + $0x168] ss:$12 sps:$4 sm:$0xff]  }
  0xf6   :  { %v2029_v35 = vpop.f32.mrf.mxu0 }
  0xf7   :  { %v175_v36 = vsel %vm173_vm3, %v144_v34, 0.0  ;;  %v2116_v34 = vld [vmem:[#allocation5 + $0x1b0] ss:$12 sps:$4 sm:$0xff]  }
  0xf8   :  { %v178_v37 = vsel %vm177_vm4, %v175_v36, 0.0  ;;  %v140_v38 = vpop.f32.mrf.mxu0  ;;  %v2124_v35 = vld [vmem:[#allocation5 + $0x19c] ss:$12 sps:$4 sm:$0xff]  }
  0xf9   :  { %v179_v39 = vrot.slane %v178_v37, 4  ;;  %v145_v40 = vmax.f32 %v140_v38, 0.0  ;;  %v2137_v36 = vld [vmem:[#allocation5 + $0x150] ss:$12 sps:$4 sm:$0xff]   ;;  %v2122_v38 = vld [vmem:[#allocation5 + $0x198] ss:$12 sps:$4 sm:$0xff]  }
  0xfa   :  { %v2030_v41 = vpop.f32.mrf.mxu0 }
  0xfb   :  { %v180_v42 = vadd.f32 %v179_v39, %v178_v37  ;;  %v176_v43 = vsel %vm174_vm5, %v145_v40, 0.0  ;;  %v2145_v37 = vld [vmem:[#allocation5 + $0x13c] ss:$12 sps:$4 sm:$0xff]   ;;  %v2130_v39 = vld [vmem:[#allocation5 + $0x184] ss:$12 sps:$4 sm:$0xff]  }
  0xfc   :  { %v185_v44 = vsel %vm177_vm4, %v176_v43, 0.0  ;;  %v2143_v40 = vld [vmem:[#allocation5 + $0x138] ss:$12 sps:$4 sm:$0xff]  }
  0xfd   :  { %v181_v45 = vrot.slane %v180_v42, 2  ;;  %v186_v46 = vrot.slane %v185_v44, 4  ;;  %v2151_v41 = vld [vmem:[#allocation5 + $0x124] ss:$12 sps:$4 sm:$0xff]   ;;  %v2136_v43 = vld [vmem:[#allocation5 + $0x2ec] ss:$12 sps:$4 sm:$0xff]  }
  0xff   :  { %v182_v47 = vadd.f32 %v181_v45, %v180_v42  ;;  %v187_v48 = vadd.f32 %v186_v46, %v185_v44  ;;  %v2128_v42 = vld [vmem:[#allocation5 + $0x180] ss:$12 sps:$4 sm:$0xff]   ;;  %v2134_v46 = vld [vmem:[#allocation5 + $0x2e8] ss:$12 sps:$4 sm:$0xff]  }
 0x100   :  { %v2149_v44 = vld [vmem:[#allocation5 + $0x120] ss:$12 sps:$4 sm:$0xff]  }
 0x101   :  { %v183_v49 = vrot.slane %v182_v47, 1  ;;  %v188_v50 = vrot.slane %v187_v48, 2  ;;  %v2157_v45 = vld [vmem:[#allocation5 + $0x10c] ss:$12 sps:$4 sm:$0xff]  }
 0x103   :  { %v184_v51 = vadd.f32 %v183_v49, %v182_v47  ;;  %v189_v52 = vadd.f32 %v188_v50, %v187_v48  ;;  %v2142_v47 = vld [vmem:[#allocation5 + $0x2d4] ss:$12 sps:$4 sm:$0xff]   ;;  %v2140_v50 = vld [vmem:[#allocation5 + $0x2d0] ss:$12 sps:$4 sm:$0xff]  }
 0x104   :  { %v2155_v48 = vld [vmem:[#allocation5 + $0x108] ss:$12 sps:$4 sm:$0xff]  }
 0x105   :  { %v190_v53 = vrot.slane %v189_v52, 1  ;;  %v193_v54 = vpack.c.bf16 %v184_v51, %v184_v51  ;;  %v2163_v49 = vld [vmem:[#allocation5 + $0xf4] ss:$12 sps:$4 sm:$0xff]   ;;  %v2148_v51 = vld [vmem:[#allocation5 + $0x2bc] ss:$12 sps:$4 sm:$0xff]  }
 0x107   :  { %v191_v55 = vadd.f32 %v190_v53, %v189_v52  ;;  %v252_v57 = vunpack.c.l.b16 %v193_v54  ;;  %v2161_v52 = vld [vmem:[#allocation5 + $0xf0] ss:$12 sps:$4 sm:$0xff]   ;;  %v2146_v53 = vld [vmem:[#allocation5 + $0x2b8] ss:$12 sps:$4 sm:$0xff]  }
 0x108   :  { %v2154_v54 = vld [vmem:[#allocation5 + $0x2a4] ss:$12 sps:$4 sm:$0xff]  }
 0x109   :  { %v194_v56 = vpack.c.bf16 %v191_v55, %v191_v55  ;;  %v2152_v55 = vld [vmem:[#allocation5 + $0x2a0] ss:$12 sps:$4 sm:$0xff]  }
 0x10b   :  { %v253_v58 = vunpack.c.l.b16 %v194_v56  ;;  %v2160_v56 = vld [vmem:[#allocation5 + $0x28c] ss:$12 sps:$4 sm:$0xff]  }
 0x10d   :  { %v255_v60 = vsel %vm254_vm6, %v253_v58, %v252_v57  ;;  %v2158_v57 = vld [vmem:[#allocation5 + $0x288] ss:$12 sps:$4 sm:$0xff]  }
 0x10e   :  { %v256_v61 = vpack.c.b16 %v255_v60, %v255_v60  ;;  %v2166_v58 = vld [vmem:[#allocation5 + $0x274] ss:$12 sps:$4 sm:$0xff]   ;;  %v2164_v60 = vld [vmem:[#allocation5 + $0x270] ss:$12 sps:$4 sm:$0xff]  }
 0x110   :  { %1797 = vmatmul.mubr.msk.bf16.vlgmr.msra.gmra.mxu0 %vm177_vm4, %v256_v61  ;;  %1798 = vmatmul.mubr.msk.bf16.vlgmr.msra.gmra.mxu1 %vm177_vm4, %v256_v61 }
 0x111   :  { %471 = vmatpush1.bf16.msra.mxu0 %v2071_v59  ;;  %494 = vmatprep.mubr.bf16.mxu0 %v2349_v1  ;;  %v2101_v1 = vld [vmem:[#allocation5 + $0x60] ss:$12 sps:$4 sm:$0xff]   ;;  %v2169_v59 = vld [vmem:[#allocation5 + $0xdc] ss:$12 sps:$4 sm:$0xff]  }
 0x112   :  { %472 = vmatprep.subr.bf16.mxu0 %v2076_v62  ;;  %1494 = vmatpush1.bf16.msra.mxu1 %v2083_v63  ;;  %v2172_v62 = vld [vmem:[#allocation5 + $0x25c] ss:$12 sps:$4 sm:$0xff]   ;;  %v2175_v63 = vld [vmem:[#allocation5 + $0xc4] ss:$12 sps:$4 sm:$0xff]  }
 0x113   :  { %1495 = vmatprep.subr.bf16.mxu1 %v2091_v0  ;;  %v2170_v0 = vld [vmem:[#allocation5 + $0x258] ss:$12 sps:$4 sm:$0xff]  }
 0x115   :  { %473 = vmatpush1.bf16.msra.mxu0 %v2074_v2  ;;  %v2173_v2 = vld [vmem:[#allocation5 + $0xc0] ss:$12 sps:$4 sm:$0xff]  }
 0x116   :  { %474 = vmatprep.subr.bf16.mxu0 %v2079_v3  ;;  %1496 = vmatpush1.bf16.msra.mxu1 %v2089_v4  ;;  %v2178_v3 = vld [vmem:[#allocation5 + $0x244] ss:$12 sps:$4 sm:$0xff]   ;;  %v2181_v4 = vld [vmem:[#allocation5 + $0x3ac] ss:$12 sps:$4 sm:$0xff]  }
 0x117   :  { %1497 = vmatprep.subr.bf16.mxu1 %v2097_v5  ;;  %v2176_v5 = vld [vmem:[#allocation5 + $0x240] ss:$12 sps:$4 sm:$0xff]  }
 0x119   :  { %475 = vmatpush1.bf16.msra.mxu0 %v2077_v6  ;;  %v2182_v6 = vld [vmem:[#allocation5 + $0x170] ss:$12 sps:$4 sm:$0xff]  }
 0x11a   :  { %476 = vmatprep.subr.bf16.mxu0 %v2082_v7  ;;  %1498 = vmatpush1.bf16.msra.mxu1 %v2095_v8  ;;  %v222_v7 = vsub.s32 0, %v2408_v29  ;;  %v230_v8 = vsub.s32 2, %v2408_v29 }
 0x11b   :  { %1499 = vmatprep.subr.bf16.mxu1 %v2103_v9  ;;  %v2423_v9 = vld [vmem:[%s2479_s4] sm:$0x3f] }
 0x11d   :  { %477 = vmatpush1.bf16.msra.mxu0 %v2080_v10  ;;  %v226_v10 = vsub.s32 1, %v2408_v29 }
 0x11e   :  { %1534 = vmatprep.subr.bf16.mxu0 %v2088_v11  ;;  %1500 = vmatpush1.bf16.msra.mxu1 %v2101_v1  ;;  %v234_v11 = vsub.s32 3, %v2408_v29  ;;  %v223_v1 = vrot.slane %v2423_v9, %v222_v7 }
 0x11f   :  { %1501 = vmatprep.subr.bf16.mxu1 %v2109_v12  ;;  %v231_v12 = vrot.slane %v2423_v9, %v230_v8 }
 0x120   :  { %1799 = vmatmul.mubr.msk.bf16.vlgmr.msra.gmra.mxu0 %vm177_vm4, %v256_v61  ;;  %v2167_v61 = vld [vmem:[#allocation5 + $0xd8] ss:$12 sps:$4 sm:$0xff]  }
 0x121   :  { %1535 = vmatpush1.bf16.msra.mxu0 %v2086_v13  ;;  %v227_v13 = vrot.slane %v2423_v9, %v226_v10 }
 0x122   :  { %1536 = vmatprep.subr.bf16.mxu0 %v2094_v14  ;;  %1502 = vmatpush1.bf16.msra.mxu1 %v2107_v15  ;;  %v235_v14 = vrot.slane %v2423_v9, %v234_v11  ;;  %v2213_v11 = vld [vmem:[#allocation5 + $0x20] ss:$12 sps:$4 sm:$0xff]  }
 0x123   :  { %1503 = vmatprep.subr.bf16.mxu1 %v2115_v16 }
 0x125   :  { %1537 = vmatpush1.bf16.msra.mxu0 %v2092_v17 }
 0x126   :  { %1538 = vmatprep.subr.bf16.mxu0 %v2100_v18  ;;  %1504 = vmatpush1.bf16.msra.mxu1 %v2113_v19 }
 0x127   :  { %1505 = vmatprep.subr.bf16.mxu1 %v2121_v20 }
 0x129   :  { %1539 = vmatpush1.bf16.msra.mxu0 %v2098_v21 }
 0x12a   :  { %1540 = vmatprep.subr.bf16.mxu0 %v2106_v22  ;;  %1506 = vmatpush1.bf16.msra.mxu1 %v2119_v23 }
 0x12b   :  { %1507 = vmatprep.subr.bf16.mxu1 %v2127_v24 }
 0x12d   :  { %1541 = vmatpush1.bf16.msra.mxu0 %v2104_v25 }
 0x12e   :  { %1542 = vmatprep.subr.bf16.mxu0 %v2112_v26  ;;  %1508 = vmatpush1.bf16.msra.mxu1 %v2125_v27 }
 0x12f   :  { %1509 = vmatprep.subr.bf16.mxu1 %v2133_v28 }
 0x131   :  { %1543 = vmatpush1.bf16.msra.mxu0 %v2110_v30 }
 0x132   :  { %1544 = vmatprep.subr.bf16.mxu0 %v2118_v31  ;;  %1510 = vmatpush2.bf16.msra.mxu1 %v2131_v32 }
 0x133   :  { %1511 = vmatprep.subr.bf16.mxu1 %v2139_v33 }
 0x135   :  { %1545 = vmatpush1.bf16.msra.mxu0 %v2116_v34  ;;  %v2179_v34 = vld [vmem:[#allocation5 + $0x3a8] ss:$12 sps:$4 sm:$0xff]  }
 0x136   :  { %1546 = vmatprep.subr.bf16.mxu0 %v2124_v35  ;;  %1512 = vmatpush2.bf16.msra.mxu1 %v2137_v36  ;;  %v2183_v35 = vld [vmem:[#allocation5 + $0xb0] ss:$12 sps:$4 sm:$0xff]  }
 0x137   :  { %1513 = vmatprep.subr.bf16.mxu1 %v2145_v37 }
 0x139   :  { %1547 = vmatpush1.bf16.msra.mxu0 %v2122_v38  ;;  %v2186_v38 = vld [vmem:[#allocation5 + $0x394] ss:$12 sps:$4 sm:$0xff]  }
 0x13a   :  { %1548 = vmatprep.subr.bf16.mxu0 %v2130_v39  ;;  %1514 = vmatpush2.bf16.msra.mxu1 %v2143_v40  ;;  %v2187_v39 = vld [vmem:[#allocation5 + $0x158] ss:$12 sps:$4 sm:$0xff]   ;;  %v2184_v40 = vld [vmem:[#allocation5 + $0x390] ss:$12 sps:$4 sm:$0xff]  }
 0x13b   :  { %1515 = vmatprep.subr.bf16.mxu1 %v2151_v41  ;;  %v2188_v41 = vld [vmem:[#allocation5 + $0x98] ss:$12 sps:$4 sm:$0xff]  }
 0x13d   :  { %1549 = vmatpush1.bf16.msra.mxu0 %v2128_v42  ;;  %v242_v42 = vsub.s32 5, %v2408_v29 }
 0x13e   :  { %1550 = vmatprep.subr.bf16.mxu0 %v2136_v43  ;;  %1516 = vmatpush2.bf16.msra.mxu1 %v2149_v44  ;;  %v2191_v43 = vld [vmem:[#allocation5 + $0x37c] ss:$12 sps:$4 sm:$0xff]   ;;  %v2192_v44 = vld [vmem:[#allocation5 + $0x140] ss:$12 sps:$4 sm:$0xff]  }
 0x13f   :  { %1517 = vmatprep.subr.bf16.mxu1 %v2157_v45  ;;  %v243_v45 = vrot.slane %v2423_v9, %v242_v42 }
 0x141   :  { %1551 = vmatpush2.bf16.msra.mxu0 %v2134_v46  ;;  %v2189_v46 = vld [vmem:[#allocation5 + $0x378] ss:$12 sps:$4 sm:$0xff]  }
 0x142   :  { %1552 = vmatprep.subr.bf16.mxu0 %v2142_v47  ;;  %1518 = vmatpush2.bf16.msra.mxu1 %v2155_v48  ;;  %v2193_v47 = vld [vmem:[#allocation5 + $0x80] ss:$12 sps:$4 sm:$0xff]  }
 0x143   :  { %1519 = vmatprep.subr.bf16.mxu1 %v2163_v49  ;;  %v2196_v49 = vld [vmem:[#allocation5 + $0x364] ss:$12 sps:$4 sm:$0xff]  }
 0x145   :  { %1553 = vmatpush2.bf16.msra.mxu0 %v2140_v50  ;;  %v2197_v50 = vld [vmem:[#allocation5 + $0x128] ss:$12 sps:$4 sm:$0xff]  }
 0x146   :  { %1554 = vmatprep.subr.bf16.mxu0 %v2148_v51  ;;  %1520 = vmatpush2.bf16.msra.mxu1 %v2161_v52 }
 0x147   :  { %1521 = vmatprep.subr.bf16.mxu1 %v2169_v59 }
 0x149   :  { %1555 = vmatpush2.bf16.msra.mxu0 %v2146_v53  ;;  %v2194_v53 = vld [vmem:[#allocation5 + $0x360] ss:$12 sps:$4 sm:$0xff]  }
 0x14a   :  { %1556 = vmatprep.subr.bf16.mxu0 %v2154_v54  ;;  %1522 = vmatpush2.bf16.msra.mxu1 %v2167_v61  ;;  %v2198_v54 = vld [vmem:[#allocation5 + $0x68] ss:$12 sps:$4 sm:$0xff]  }
 0x14b   :  { %1523 = vmatprep.subr.bf16.mxu1 %v2175_v63  ;;  %v2199_v61 = vld [vmem:[#allocation5 + $0x348] ss:$12 sps:$4 sm:$0xff]  }
 0x14c   :  { %v2206_v63 = vld [vmem:[#allocation5 + $0x334] ss:$12 sps:$4 sm:$0xff]  }
 0x14d   :  { %1557 = vmatpush2.bf16.msra.mxu0 %v2152_v55 }
 0x14e   :  { %1558 = vmatprep.subr.bf16.mxu0 %v2160_v56  ;;  %1524 = vmatpush2.bf16.msra.mxu1 %v2173_v2  ;;  %v2201_v56 = vld [vmem:[#allocation5 + $0x34c] ss:$12 sps:$4 sm:$0xff]   ;;  %v2204_v2 = vld [vmem:[#allocation5 + $0x330] ss:$12 sps:$4 sm:$0xff]  }
 0x14f   :  { %1575 = vmatprep.subr.bf16.mxu1 %v2181_v4  ;;  %v2211_v4 = vld [vmem:[#allocation5 + $0x31c] ss:$12 sps:$4 sm:$0xff]  }
 0x151   :  { %1559 = vmatpush2.bf16.msra.mxu0 %v2158_v57  ;;  %v2202_v57 = vld [vmem:[#allocation5 + $0x110] ss:$12 sps:$4 sm:$0xff]  }
 0x152   :  { %1560 = vmatprep.subr.bf16.mxu0 %v2166_v58 }
 0x155   :  { %1561 = vmatpush2.bf16.msra.mxu0 %v2164_v60 }
 0x156   :  { %1562 = vmatprep.subr.bf16.mxu0 %v2172_v62  ;;  %v2203_v62 = vld [vmem:[#allocation5 + $0x50] ss:$12 sps:$4 sm:$0xff]  }
 0x159   :  { %1563 = vmatpush2.bf16.msra.mxu0 %v2170_v0  ;;  %v2207_v0 = vld [vmem:[#allocation5 + $0xf8] ss:$12 sps:$4 sm:$0xff]  }
 0x15a   :  { %1564 = vmatprep.subr.bf16.mxu0 %v2178_v3  ;;  %v2208_v3 = vld [vmem:[#allocation5 + $0x38] ss:$12 sps:$4 sm:$0xff]  }
 0x15d   :  { %1565 = vmatpush2.bf16.msra.mxu0 %v2176_v5  ;;  %v2212_v5 = vld [vmem:[#allocation5 + $0xe0] ss:$12 sps:$4 sm:$0xff]  }
 0x15e   :  { %1951 = vmatprep.subr.bf16.mxu0 %v2182_v6  ;;  %v2209_v6 = vld [vmem:[#allocation5 + $0x318] ss:$12 sps:$4 sm:$0xff]  }
 0x1d0   :  { %v414_v15 = vpop.f32.mrf.mxu0  ;;  %v455_v16 = vpop.f32.mrf.mxu1 }
 0x1d1   :  { %v415_v17 = vadd.f32 %v414_v15, %v223_v1  ;;  %v456_v18 = vadd.f32 %v455_v16, %v231_v12  ;;  %v2216_v1 = vld [vmem:[#allocation5 + $0x304] ss:$12 sps:$4 sm:$0xff]   ;;  %v2217_v12 = vld [vmem:[#allocation5 + $0xc8] ss:$12 sps:$4 sm:$0xff]   ;;  %v2221_v15 = vld [vmem:[#allocation5 + $0x46c] ss:$12 sps:$4 sm:$0xff]  }
 0x1d2   :  { %v416_v19 = vpop.f32.mrf.mxu0  ;;  %v457_v20 = vpop.f32.mrf.mxu1  ;;  %v2222_v16 = vld [vmem:[#allocation5 + $0x2f0] ss:$12 sps:$4 sm:$0xff]  }
 0x1d3   :  { %v417_v21 = vadd.f32 %v416_v19, %v227_v13  ;;  %v458_v22 = vadd.f32 %v457_v20, %v235_v14  ;;  %v503_v23 = vmax.f32 %v415_v17, 0.0  ;;  %v505_v24 = vmax.f32 %v456_v18, 0.0  ;;  %v2214_v13 = vld [vmem:[#allocation5 + $0x300] ss:$12 sps:$4 sm:$0xff]   ;;  %v2218_v14 = vld [vmem:[#allocation5 + $0x8] ss:$12 sps:$4 sm:$0xff]  }
 0x1d4   :  { %v418_v25 = vpop.f32.mrf.mxu0  ;;  %v459_v26 = vpop.f32.mrf.mxu1  ;;  %v2219_v17 = vld [vmem:[#allocation5 + $0x468] ss:$12 sps:$4 sm:$0xff]   ;;  %v2223_v18 = vld [vmem:[#allocation5 + $0x230] ss:$12 sps:$4 sm:$0xff]   ;;  %v2227_v20 = vld [vmem:[#allocation5 + $0x2d8] ss:$12 sps:$4 sm:$0xff]  }
 0x1d5   :  { %v504_v27 = vmax.f32 %v417_v21, 0.0  ;;  %v506_v28 = vmax.f32 %v458_v22, 0.0  ;;  %v2439_v36 = vpack.c.bf16 %v503_v23, %v503_v23  ;;  %v2441_v37 = vpack.c.bf16 %v505_v24, %v505_v24  ;;  %v2226_v19 = vld [vmem:[#allocation5 + $0x454] ss:$12 sps:$4 sm:$0xff]   ;;  %v2224_v21 = vld [vmem:[#allocation5 + $0x450] ss:$12 sps:$4 sm:$0xff]  }
 0x1d6   :  { %v419_v30 = vpop.f32.mrf.mxu0  ;;  %v460_v31 = vpop.f32.mrf.mxu1  ;;  %v2228_v22 = vld [vmem:[#allocation5 + $0x218] ss:$12 sps:$4 sm:$0xff]   ;;  %v2231_v23 = vld [vmem:[#allocation5 + $0x43c] ss:$12 sps:$4 sm:$0xff]   ;;  %v2232_v24 = vld [vmem:[#allocation5 + $0x2c0] ss:$12 sps:$4 sm:$0xff]  }
 0x1d7   :  { %v512_v32 = vpack.c.bf16 %v504_v27, %v504_v27  ;;  %v2437_v33 = vpack.c.bf16 %v506_v28, %v506_v28  ;;  %v2229_v25 = vld [vmem:[#allocation5 + $0x438] ss:$12 sps:$4 sm:$0xff]   ;;  %v2233_v26 = vld [vmem:[#allocation5 + $0x200] ss:$12 sps:$4 sm:$0xff]   ;;  %v2237_v28 = vld [vmem:[#allocation5 + $0x2a8] ss:$12 sps:$4 sm:$0xff]  }
 0x1d8   :  { %v2236_v27 = vld [vmem:[#allocation5 + $0x424] ss:$12 sps:$4 sm:$0xff]   ;;  %v2234_v30 = vld [vmem:[#allocation5 + $0x420] ss:$12 sps:$4 sm:$0xff]   ;;  %v2238_v31 = vld [vmem:[#allocation5 + $0x1e8] ss:$12 sps:$4 sm:$0xff]  }
 0x1d9   :  { %1525 = vmatprep.mubr.bf16.mxu1 %v512_v32  ;;  %1566 = vmatprep.mubr.bf16.mxu0 %v2437_v33 }
 0x1da   :  { %1526 = vmatmul.mubr.bf16.vlgmr.msra.gmra.mxu1 %v2439_v36  ;;  %1567 = vmatmul.mubr.bf16.vlgmr.msra.gmra.mxu0 %v2441_v37 }
 0x1db   :  { %1576 = vmatpush1.bf16.msra.mxu1 %v2179_v34  ;;  %1952 = vmatpush3.bf16.msra.mxu0 %v2183_v35  ;;  %v2239_v34 = vld [vmem:[#allocation5 + $0x408] ss:$12 sps:$4 sm:$0xff]   ;;  %v2243_v35 = vld [vmem:[#allocation5 + $0x1d0] ss:$12 sps:$4 sm:$0xff]  }
 0x1dc   :  { %1648 = vmatprep.mubr.bf16.mxu0 %v512_v32  ;;  %1577 = vmatprep.subr.bf16.mxu1 %v2186_v38  ;;  %v2241_v32 = vld [vmem:[#allocation5 + $0x40c] ss:$12 sps:$4 sm:$0xff]   ;;  %v2246_v38 = vld [vmem:[#allocation5 + $0x3f4] ss:$12 sps:$4 sm:$0xff]  }
 0x1dd   :  { %1953 = vmatprep.subr.bf16.mxu0 %v2187_v39  ;;  %v2247_v39 = vld [vmem:[#allocation5 + $0x278] ss:$12 sps:$4 sm:$0xff]  }
 0x1df   :  { %1578 = vmatpush1.bf16.msra.mxu1 %v2184_v40  ;;  %1954 = vmatpush3.bf16.msra.mxu0 %v2188_v41  ;;  %v2244_v40 = vld [vmem:[#allocation5 + $0x3f0] ss:$12 sps:$4 sm:$0xff]   ;;  %v2248_v41 = vld [vmem:[#allocation5 + $0x1b8] ss:$12 sps:$4 sm:$0xff]  }
 0x1e0   :  { %v2448_v48 = vpop.f32.mrf.mxu0  ;;  %1579 = vmatprep.subr.bf16.mxu1 %v2191_v43  ;;  %1955 = vmatprep.subr.bf16.mxu0 %v2192_v44  ;;  %v2251_v43 = vld [vmem:[#allocation5 + $0x3dc] ss:$12 sps:$4 sm:$0xff]   ;;  %v2252_v44 = vld [vmem:[#allocation5 + $0x260] ss:$12 sps:$4 sm:$0xff]  }
 0x1e2   :  { %v498_v51 = vpop.f32.mrf.mxu0 }
 0x1e3   :  { %v499_v52 = vadd.f32 %v498_v51, %v243_v45  ;;  %1580 = vmatpush1.bf16.msra.mxu1 %v2189_v46  ;;  %1956 = vmatpush3.bf16.msra.mxu0 %v2193_v47  ;;  %v2249_v45 = vld [vmem:[#allocation5 + $0x3d8] ss:$12 sps:$4 sm:$0xff]   ;;  %v2253_v46 = vld [vmem:[#allocation5 + $0x1a0] ss:$12 sps:$4 sm:$0xff]  }
 0x1e4   :  { %v500_v55 = vpop.f32.mrf.mxu0  ;;  %1581 = vmatprep.subr.bf16.mxu1 %v2196_v49  ;;  %1957 = vmatprep.subr.bf16.mxu0 %v2197_v50  ;;  %v2256_v49 = vld [vmem:[#allocation5 + $0x3c4] ss:$12 sps:$4 sm:$0xff]   ;;  %v2257_v50 = vld [vmem:[#allocation5 + $0x248] ss:$12 sps:$4 sm:$0xff]   ;;  %v2254_v51 = vld [vmem:[#allocation5 + $0x3c0] ss:$12 sps:$4 sm:$0xff]  }
 0x1e5   :  { %v508_v58 = vmax.f32 %v499_v52, 0.0  ;;  %v2258_v52 = vld [vmem:[#allocation5 + $0x188] ss:$12 sps:$4 sm:$0xff]  }
 0x1e6   :  { %v501_v59 = vpop.f32.mrf.mxu0 }
 0x1e7   :  { %v2450_v60 = vpack.c.bf16 %v508_v58, %v508_v58  ;;  %1582 = vmatpush1.bf16.msra.mxu1 %v2194_v53  ;;  %1958 = vmatpush3.bf16.msra.mxu0 %v2198_v54  ;;  %v2260_v54 = vld [vmem:[#allocation5 + $0x3b0] ss:$12 sps:$4 sm:$0xff]   ;;  %v2264_v58 = vld [vmem:[#allocation5 + $0x380] ss:$12 sps:$4 sm:$0xff]   ;;  %v2265_v59 = vld [vmem:[#allocation5 + $0x428] ss:$12 sps:$4 sm:$0xff]  }
 0x1e8   :  { %1583 = vmatprep.subr.bf16.mxu1 %v2201_v56  ;;  %1959 = vmatprep.subr.bf16.mxu0 %v2202_v57  ;;  %v2261_v56 = vld [vmem:[#allocation5 + $0x458] ss:$12 sps:$4 sm:$0xff]   ;;  %v2263_v57 = vld [vmem:[#allocation5 + $0x440] ss:$12 sps:$4 sm:$0xff]  }
 0x1e9   :  { %1607 = vmatprep.mubr.bf16.mxu1 %v2450_v60 }
 0x1eb   :  { %1584 = vmatpush1.bf16.msra.mxu1 %v2199_v61  ;;  %1960 = vmatpush3.bf16.msra.mxu0 %v2203_v62  ;;  %v2266_v61 = vld [vmem:[#allocation5 + $0x368] ss:$12 sps:$4 sm:$0xff]   ;;  %v2267_v62 = vld [vmem:[#allocation5 + $0x410] ss:$12 sps:$4 sm:$0xff]  }
 0x1ec   :  { %1585 = vmatprep.subr.bf16.mxu1 %v2206_v63  ;;  %1961 = vmatprep.subr.bf16.mxu0 %v2207_v0  ;;  %v2268_v63 = vld [vmem:[#allocation5 + $0x350] ss:$12 sps:$4 sm:$0xff]   ;;  %v2269_v0 = vld [vmem:[#allocation5 + $0x3f8] ss:$12 sps:$4 sm:$0xff]  }
 0x1ef   :  { %1586 = vmatpush1.bf16.msra.mxu1 %v2204_v2  ;;  %1962 = vmatpush3.bf16.msra.mxu0 %v2208_v3  ;;  %v2271_v2 = vld [vmem:[#allocation5 + $0x3e0] ss:$12 sps:$4 sm:$0xff]   ;;  %v2273_v3 = vld [vmem:[#allocation5 + $0x3c8] ss:$12 sps:$4 sm:$0xff]  }
 0x1f0   :  { %1587 = vmatprep.subr.bf16.mxu1 %v2211_v4  ;;  %1963 = vmatprep.subr.bf16.mxu0 %v2212_v5  ;;  %v2274_v4 = vld [vmem:[#allocation5 + $0x308] ss:$12 sps:$4 sm:$0xff]  }
 0x1f1   :  { %v509_v5 = vld [vmem:[%s2479_s4 + $0x6] sm:$0x7] }
 0x1f3   :  { %1588 = vmatpush1.bf16.msra.mxu1 %v2209_v6  ;;  %1964 = vmatpush3.bf16.msra.mxu0 %v2213_v11  ;;  %v713_v6 = vrot.slane %v509_v5, %v222_v7  ;;  %v717_v11 = vrot.slane %v509_v5, %v226_v10 }
 0x1f4   :  { %1589 = vmatprep.subr.bf16.mxu1 %v2216_v1  ;;  %1965 = vmatprep.subr.bf16.mxu0 %v2217_v12 }
 0x1f7   :  { %1590 = vmatpush1.bf16.msra.mxu1 %v2214_v13  ;;  %1966 = vmatpush3.bf16.msra.mxu0 %v2218_v14 }
 0x1f8   :  { %1591 = vmatprep.subr.bf16.mxu1 %v2221_v15  ;;  %1973 = vmatprep.subr.bf16.mxu0 %v2222_v16 }
 0x1fa   :  { %1649 = vmatmul.mubr.bf16.vlgmr.msra.gmra.mxu0 %v2439_v36  ;;  %v238_v36 = vsub.s32 4, %v2408_v29 }
 0x1fb   :  { %1592 = vmatpush2.bf16.msra.mxu1 %v2219_v17  ;;  %1974 = vmatpush3.bf16.msra.mxu0 %v2223_v18 }
 0x1fc   :  { %1688 = vmatprep.mubr.bf16.mxu0 %v2437_v33  ;;  %1593 = vmatprep.subr.bf16.mxu1 %v2226_v19  ;;  %v2242_v33 = vld [vmem:[#allocation5 + $0x290] ss:$12 sps:$4 sm:$0xff]   ;;  %v239_v42 = vrot.slane %v2423_v9, %v238_v36 }
 0x1fd   :  { %1975 = vmatprep.subr.bf16.mxu0 %v2227_v20  ;;  %v2259_v9 = vld [vmem:[#allocation5 + $0x470] ss:$12 sps:$4 sm:$0xff]  }
 0x1fe   :  { %v497_v47 = vadd.f32 %v2448_v48, %v239_v42  ;;  %v2262_v48 = vld [vmem:[#allocation5 + $0x398] ss:$12 sps:$4 sm:$0xff]  }
 0x1ff   :  { %1594 = vmatpush2.bf16.msra.mxu1 %v2224_v21  ;;  %1976 = vmatpush3.bf16.msra.mxu0 %v2228_v22 }
 0x200   :  { %1595 = vmatprep.subr.bf16.mxu1 %v2231_v23  ;;  %1977 = vmatprep.subr.bf16.mxu0 %v2232_v24  ;;  %v507_v53 = vmax.f32 %v497_v47, 0.0 }
 0x202   :  { %v515_v55 = vpack.c.bf16 %v507_v53, %v507_v53  ;;  %v1944_v53 = vld [vmem:[%s2479_s4 + $0x9] ss:$0 sm:$0xff] }
 0x203   :  { %1596 = vmatpush2.bf16.msra.mxu1 %v2229_v25  ;;  %1978 = vmatpush3.bf16.msra.mxu0 %v2233_v26 }
 0x204   :  { %1597 = vmatprep.subr.bf16.mxu1 %v2236_v27  ;;  %1979 = vmatprep.subr.bf16.mxu0 %v2237_v28 }
 0x207   :  { %1598 = vmatpush2.bf16.msra.mxu1 %v2234_v30  ;;  %1980 = vmatpush3.bf16.msra.mxu0 %v2238_v31 }
 0x208   :  { %1599 = vmatprep.subr.bf16.mxu1 %v2241_v32  ;;  %1981 = vmatprep.subr.bf16.mxu0 %v2242_v33 }
 0x20b   :  { %1600 = vmatpush2.bf16.msra.mxu1 %v2239_v34  ;;  %1982 = vmatpush3.bf16.msra.mxu0 %v2243_v35 }
 0x20c   :  { %1601 = vmatprep.subr.bf16.mxu1 %v2246_v38  ;;  %1983 = vmatprep.subr.bf16.mxu0 %v2247_v39 }
 0x20f   :  { %1602 = vmatpush2.bf16.msra.mxu1 %v2244_v40  ;;  %1984 = vmatpush3.bf16.msra.mxu0 %v2248_v41  ;;  %v721_v40 = vrot.slane %v509_v5, %v230_v8 }
 0x210   :  { %1603 = vmatprep.subr.bf16.mxu1 %v2251_v43  ;;  %1985 = vmatprep.subr.bf16.mxu0 %v2252_v44 }
 0x213   :  { %1604 = vmatpush2.bf16.msra.mxu1 %v2249_v45  ;;  %1986 = vmatpush3.bf16.msra.mxu0 %v2253_v46 }
 0x214   :  { %1605 = vmatprep.subr.bf16.mxu1 %v2256_v49  ;;  %1987 = vmatprep.subr.bf16.mxu0 %v2257_v50 }
 0x217   :  { %1606 = vmatpush2.bf16.msra.mxu1 %v2254_v51  ;;  %1988 = vmatpush3.bf16.msra.mxu0 %v2258_v52 }
 0x218   :  { %1995 = vmatprep.subr.bf16.mxu1 %v2259_v9 }
 0x21a   :  { %1608 = vmatmul.mubr.bf16.vlgmr.msra.gmra.mxu1 %v515_v55  ;;  %1689 = vmatmul.mubr.bf16.vlgmr.msra.gmra.mxu0 %v2441_v37  ;;  %v2270_v37 = vld [vmem:[#allocation5 + $0x338] ss:$12 sps:$4 sm:$0xff]  }
 0x21b   :  { %1996 = vmatpush3.bf16.msra.mxu1 %v2260_v54  ;;  %1728 = vmatprep.mubr.bf16.mxu1 %v2450_v60  ;;  %v2272_v60 = vld [vmem:[#allocation5 + $0x320] ss:$12 sps:$4 sm:$0xff]  }
 0x21c   :  { %1997 = vmatprep.subr.bf16.mxu1 %v2261_v56 }
 0x21f   :  { %1998 = vmatpush3.bf16.msra.mxu1 %v2262_v48 }
 0x220   :  { %1999 = vmatprep.subr.bf16.mxu1 %v2263_v57 }
 0x223   :  { %2000 = vmatpush3.bf16.msra.mxu1 %v2264_v58 }
 0x224   :  { %2001 = vmatprep.subr.bf16.mxu1 %v2265_v59 }
 0x227   :  { %2002 = vmatpush3.bf16.msra.mxu1 %v2266_v61 }
 0x228   :  { %2003 = vmatprep.subr.bf16.mxu1 %v2267_v62 }
 0x22b   :  { %2004 = vmatpush3.bf16.msra.mxu1 %v2268_v63 }
 0x22c   :  { %2005 = vmatprep.subr.bf16.mxu1 %v2269_v0 }
 0x22f   :  { %2006 = vmatpush3.bf16.msra.mxu1 %v2270_v37 }
 0x230   :  { %2007 = vmatprep.subr.bf16.mxu1 %v2271_v2 }
 0x233   :  { %2008 = vmatpush3.bf16.msra.mxu1 %v2272_v60 }
 0x234   :  { %2009 = vmatprep.subr.bf16.mxu1 %v2273_v3 }
 0x237   :  { %2010 = vmatpush3.bf16.msra.mxu1 %v2274_v4 }
 0x23a   :  { %1729 = vmatmul.mubr.bf16.vlgmr.msra.gmra.mxu1 %v515_v55 }
 0x29a   :  { %v1527_v1 = vpop.f32.mrf.mxu1  ;;  %v1568_v12 = vpop.f32.mrf.mxu0 }
 0x29b   :  { %v1528_v13 = vadd.f32 %v1527_v1, %v713_v6 }
 0x29c   :  { %v1529_v14 = vpop.f32.mrf.mxu1  ;;  %v1570_v15 = vpop.f32.mrf.mxu0 }
 0x29d   :  { %v1569_v16 = vadd.f32 %v1568_v12, %v1528_v13  ;;  %v1530_v17 = vadd.f32 %v1529_v14, %v717_v11 }
 0x29e   :  { %v1531_v18 = vpop.f32.mrf.mxu1  ;;  %v1572_v19 = vpop.f32.mrf.mxu0 }
 0x29f   :  { %v1571_v20 = vadd.f32 %v1570_v15, %v1530_v17 }
 0x2a0   :  { %v1532_v21 = vpop.f32.mrf.mxu1  ;;  %v1573_v22 = vpop.f32.mrf.mxu0 }
 0x2ba   :  { %v1967_v23 = vpop.f32.mrf.mxu0 }
 0x2bc   :  { %v1968_v24 = vpop.f32.mrf.mxu0 }
 0x2bd   :  { %v1969_v41 = vadd.f32 %v1968_v24, %v1967_v23 }
 0x2be   :  { %v1970_v25 = vpop.f32.mrf.mxu0 }
 0x2bf   :  { %v1651_v44 = vadd.f32 %v1969_v41, %v721_v40 }
 0x2c0   :  { %v1971_v26 = vpop.f32.mrf.mxu0 }
 0x2da   :  { %v1609_v7 = vpop.f32.mrf.mxu1  ;;  %v1989_v27 = vpop.f32.mrf.mxu0 }
 0x2db   :  { %v1610_v28 = vadd.f32 %v1609_v7, %v1569_v16 }
 0x2dc   :  { %v1611_v10 = vpop.f32.mrf.mxu1  ;;  %v1990_v30 = vpop.f32.mrf.mxu0 }
 0x2dd   :  { %v1612_v31 = vadd.f32 %v1611_v10, %v1571_v20  ;;  %v1736_v34 = vmax.f32 %v1610_v28, 0.0  ;;  %v1991_v42 = vadd.f32 %v1990_v30, %v1989_v27 }
 0x2de   :  { %v1613_v32 = vpop.f32.mrf.mxu1  ;;  %v1992_v33 = vpop.f32.mrf.mxu0 }
 0x2df   :  { %v1737_v35 = vmax.f32 %v1612_v31, 0.0  ;;  %v1691_v46 = vadd.f32 %v1991_v42, %v1651_v44 }
 0x2e0   :  { %v1614_v36 = vpop.f32.mrf.mxu1  ;;  %v1993_v38 = vpop.f32.mrf.mxu0 }
 0x2e1   :  { %v1739_v39 = vadd.f32 %v1737_v35, %v1736_v34 }
 0x2fa   :  { %v2011_v43 = vpop.f32.mrf.mxu1 }
 0x2fc   :  { %v2012_v45 = vpop.f32.mrf.mxu1 }
 0x2fd   :  { %v2013_v47 = vadd.f32 %v2012_v45, %v2011_v43 }
 0x2fe   :  { %v2014_v49 = vpop.f32.mrf.mxu1 }
 0x2ff   :  { %v1731_v50 = vadd.f32 %v2013_v47, %v1691_v46 }
 0x300   :  { %v2015_v51 = vpop.f32.mrf.mxu1 }
 0x301   :  { %v1738_v52 = vmax.f32 %v1731_v50, 0.0 }
 0x303   :  { %v1740_v9 = vadd.f32 %v1739_v39, %v1738_v52 }
 0x305   :  { %v1747_v29 = vadd.f32 %v1944_v53, %v1740_v9 }
 0x307   :  { %v1748_v8 = vmul.f32 0.04, %v1747_v29 }
 0x309   :  { %1749 = vst [vmem:[#allocation7] sm:$0x3] %v1748_v8 }
 0x30a   :  { %2326 = shalt.err (!%p2323_p0)
}
 0x30b   :  { %1759 = dma.vmem_to_hbm [thread:$0]  %s1757_s22, 32, %s2480_s5, [#allocation4]  }
 0x30c   :  { %2339 = dma.done.wait [#allocation4], 32  }
 0x30d   :  { %2340 = vsyncadd [#allocation4], 4294967264 }
 0x30e   :  { %1763 = vsyncpa [#allocation3], 1 }
 0x30f   :  { %1764 = vsyncpa [#allocation6], 1 }
 0x310   :  { %1765 = vsyncpa [#allocation4], 1 }

</bundles_post_ra>
